<compile_context>
chip_gen: v7x
topology: tpu7x:2x2x1
jax: 0.10.0
libtpu: 0.0.40
codegen_flags: <defaults>
</compile_context>

<pallas_src>
import functools

import jax
import jax.numpy as jnp
from jax.experimental import pallas as pl
from jax.experimental.pallas import tpu as pltpu


# ----------------------------------------------------------------------------
# Kernel bodies
# ----------------------------------------------------------------------------

def _swiglu_kernel_acc(x_ref, w12_ref, wo_ref, o_ref, acc_ref):
    """One (M-tile, N-tile, H-tile) step with f32 accumulation over H."""
    h_idx = pl.program_id(2)
    th = wo_ref.shape[0]

    @pl.when(h_idx == 0)
    def _():
        acc_ref[...] = jnp.zeros_like(acc_ref)

    x = x_ref[...]                                                     # (bm, in)
    # Fused gate/up projection: one matmul of width 2*th.
    gu = jnp.dot(x, w12_ref[...], preferred_element_type=jnp.float32)  # (bm, 2*th)
    g = gu[:, :th]
    u = gu[:, th:]
    # silu(g) = g * sigmoid(g)  (sigmoid -> EUP, multiplies -> VPU)
    hid = (g * jax.nn.sigmoid(g)) * u                                  # (bm, th) f32
    acc_ref[...] += jnp.dot(hid.astype(wo_ref.dtype), wo_ref[...],
                            preferred_element_type=jnp.float32)        # (bm, tn)

    @pl.when(h_idx == pl.num_programs(2) - 1)
    def _():
        o_ref[...] = acc_ref[...].astype(o_ref.dtype)


def _swiglu_kernel_single(x_ref, w12_ref, wo_ref, o_ref):
    """Single hidden tile: no accumulator scratch / no extra VMEM round-trip."""
    th = wo_ref.shape[0]
    x = x_ref[...]
    gu = jnp.dot(x, w12_ref[...], preferred_element_type=jnp.float32)
    g = gu[:, :th]
    u = gu[:, th:]
    hid = (g * jax.nn.sigmoid(g)) * u
    o_ref[...] = jnp.dot(hid.astype(wo_ref.dtype), wo_ref[...],
                         preferred_element_type=jnp.float32).astype(o_ref.dtype)


# ----------------------------------------------------------------------------
# Tile-selection helpers
# ----------------------------------------------------------------------------

def _round_up(n, m):
    return ((n + m - 1) // m) * m


def _sublane_granule(dtype):
    """Sublane packing granule: 8 for 32-bit, 16 for 16-bit, 32 for 8-bit."""
    return {4: 8, 2: 16, 1: 32}.get(jnp.dtype(dtype).itemsize, 8)


def _choose_hidden_tile(hidden, target):
    """Return (th, hidden_pad): th is a multiple of 128 dividing hidden_pad."""
    target = max(128, (target // 128) * 128)
    h128 = _round_up(hidden, 128)
    if h128 <= target:
        return h128, h128
    t = target
    while t >= 128:
        if h128 % t == 0:
            return t, h128
        t -= 128
    # No clean divisor: pad hidden up to a multiple of the target tile.
    return target, _round_up(hidden, target)


def _choose_out_tile(out_size, target):
    """Output-N tile: full dim if small, else largest multiple-of-128 divisor."""
    if out_size <= target:
        return out_size          # full dim is always layout-legal
    target = max(128, (target // 128) * 128)
    t = target
    while t >= 128:
        if out_size % t == 0:
            return t
        t -= 128
    return out_size              # no clean divisor; keep full (layout-legal)


def _vmem_bytes(bm, th, tn, in_size, xb, wb, ob):
    """Double-buffered per-step working set."""
    return (2 * bm * in_size * xb           # x tile (double buffered)
            + 2 * in_size * (2 * th) * wb   # fused W1|W2 tile
            + 2 * th * tn * wb              # Wo tile
            + 2 * bm * tn * ob              # output tile
            + bm * tn * 4)                  # f32 accumulator scratch


def _vmem_budget_bytes():
    """75% of physical VMEM (generation-aware); safe fallback is v7x's 64 MiB."""
    try:
        cap = int(pltpu.get_tpu_info().vmem_capacity_bytes)
    except Exception:
        cap = 64 * 1024 * 1024
    return (cap * 3) // 4


# ----------------------------------------------------------------------------
# Wrapper
# ----------------------------------------------------------------------------

@functools.partial(jax.jit, static_argnames=("block_m", "block_h", "block_n"))
def swiglu_pallas(x, w1, w2, wo, *, block_m=1024, block_h=512, block_n=2048):
    """x: (..., input_size); w1/w2: (input_size, hidden); wo: (hidden, output)."""
    in_size = x.shape[-1]
    hidden = w1.shape[1]
    out_size = wo.shape[1]

    lead_shape = x.shape[:-1]
    x2d = x.reshape(-1, in_size)
    M = x2d.shape[0]

    # --- tile selection ------------------------------------------------------
    th, hidden_pad = _choose_hidden_tile(hidden, block_h)
    tn = _choose_out_tile(out_size, block_n)

    gran = _sublane_granule(x.dtype)
    bm = min(_round_up(block_m, gran), _round_up(M, gran))

    budget = _vmem_budget_bytes()
    fit = (budget * 9) // 10      # leave slack inside the scoped limit
    xb = jnp.dtype(x.dtype).itemsize
    wb = jnp.dtype(w1.dtype).itemsize
    ob = jnp.dtype(x.dtype).itemsize
    # Shrink bm first (keeps weight reuse high), then the hidden tile.
    while bm > gran and _vmem_bytes(bm, th, tn, in_size, xb, wb, ob) > fit:
        bm = max(gran, _round_up(bm // 2, gran))
    while th > 128 and _vmem_bytes(bm, th, tn, in_size, xb, wb, ob) > fit:
        th = max(128, ((th // 2) // 128) * 128)
        hidden_pad = _round_up(hidden, th)

    # --- pad ragged dims -----------------------------------------------------
    M_pad = _round_up(M, bm)
    if M_pad != M:
        x2d = jnp.pad(x2d, ((0, M_pad - M), (0, 0)))
    if hidden_pad != hidden:
        w1 = jnp.pad(w1, ((0, 0), (0, hidden_pad - hidden)))
        w2 = jnp.pad(w2, ((0, 0), (0, hidden_pad - hidden)))
        wo = jnp.pad(wo, ((0, hidden_pad - hidden), (0, 0)))

    # --- fuse W1/W2 tile-interleaved: columns of tile h = [W1_h | W2_h] -------
    n_h = hidden_pad // th
    w12 = jnp.stack([w1.reshape(in_size, n_h, th),
                     w2.reshape(in_size, n_h, th)], axis=2)
    w12 = w12.reshape(in_size, n_h * 2 * th)              # (in, 2*hidden_pad)

    grid = (M_pad // bm, out_size // tn, n_h)

    in_specs = [
        pl.BlockSpec((bm, in_size), lambda i, j, h: (i, 0)),      # x tile
        pl.BlockSpec((in_size, 2 * th), lambda i, j, h: (0, h)),  # fused W1|W2
        pl.BlockSpec((th, tn), lambda i, j, h: (h, j)),           # Wo tile
    ]
    out_specs = pl.BlockSpec((bm, tn), lambda i, j, h: (i, j))

    if n_h > 1:
        kernel = _swiglu_kernel_acc
        scratch = [pltpu.VMEM((bm, tn), jnp.float32)]
    else:
        kernel = _swiglu_kernel_single
        scratch = []

    out2d = pl.pallas_call(
        kernel,
        out_shape=jax.ShapeDtypeStruct((M_pad, out_size), x.dtype),
        grid_spec=pltpu.PrefetchScalarGridSpec(
            num_scalar_prefetch=0,
            grid=grid,
            in_specs=in_specs,
            out_specs=out_specs,
            scratch_shapes=scratch,
        ),
        compiler_params=pltpu.CompilerParams(
            dimension_semantics=("parallel", "parallel", "arbitrary"),
            vmem_limit_bytes=budget,
        ),
    )(x2d, w12, wo)

    if M_pad != M:
        out2d = out2d[:M]
    return out2d.reshape(*lead_shape, out_size)


# ----------------------------------------------------------------------------
# Demo / correctness check
# ----------------------------------------------------------------------------

def _kaiming_normal(key, out_features, in_features, dtype=jnp.float32):
    # torch.nn.init.kaiming_normal_ default: fan_in mode, a=0 -> std = sqrt(2/fan_in)
    std = jnp.sqrt(2.0 / in_features).astype(dtype)
    return jax.random.normal(key, (out_features, in_features), dtype) * std


if __name__ == "__main__":
    # Small shapes chosen to exercise every structural path:
    #   seq=7      -> M=14 (ragged M padding)
    #   hidden=300 -> padded to 384, block_h=128 -> 3 hidden tiles (accumulator)
    #   out=256    -> block_n=128 -> 2 parallel N tiles
    batch, seq = 2, 7
    input_size, hidden_size, output_size = 32, 300, 256

    key = jax.random.PRNGKey(0)
    kx, k1, k2, k3 = jax.random.split(key, 4)

    x = jax.random.normal(kx, (batch, seq, input_size), jnp.float32)

    # PyTorch Linear weights are (out, in); build then transpose to (in, out).
    w1_t = _kaiming_normal(k1, hidden_size, input_size)   # fc1.weight
    w2_t = _kaiming_normal(k2, hidden_size, input_size)   # fc2.weight
    wo_t = _kaiming_normal(k3, output_size, hidden_size)  # ofc.weight
    w1, w2, wo = w1_t.T, w2_t.T, wo_t.T

    # Multi-tile path: H accumulation + N tiling + M padding.
    out_multi = swiglu_pallas(x, w1, w2, wo, block_m=128, block_h=128, block_n=128)
    jax.block_until_ready(out_multi)

    # Single-tile path: no accumulator scratch, single N tile.
    out_single = swiglu_pallas(x, w1, w2, wo, block_m=128, block_h=512, block_n=512)
    jax.block_until_ready(out_single)

    # Pure-JAX reference (high-precision matmuls).
    with jax.default_matmul_precision("highest"):
        g = x @ w1
        ref = ((g * jax.nn.sigmoid(g)) * (x @ w2)) @ wo

    assert out_multi.shape == (batch, seq, output_size)
    assert out_single.shape == (batch, seq, output_size)
    assert jnp.allclose(out_multi, ref, atol=2e-3, rtol=2e-3)
    assert jnp.allclose(out_single, ref, atol=2e-3, rtol=2e-3)

    print("KERNEL_OK")
</pallas_src>

<mosaic_0001>
module attributes {stable_mosaic.version = 11 : i64} {
  func.func @_swiglu_kernel_acc(%arg0: i32, %arg1: i32, %arg2: i32, %arg3: memref<16x32xf32, #tpu.memory_space<vmem>>, %arg4: memref<32x256xf32, #tpu.memory_space<vmem>>, %arg5: memref<128x128xf32, #tpu.memory_space<vmem>>, %arg6: memref<16x128xf32, #tpu.memory_space<vmem>>, %arg7: memref<16x128xf32, #tpu.memory_space<vmem>>) attributes {dimension_semantics = [#tpu.dimension_semantics<parallel>, #tpu.dimension_semantics<parallel>, #tpu.dimension_semantics<arbitrary>], iteration_bounds = array<i64: 1, 2, 3>, scalar_prefetch = 0 : i64, scratch_operands = 1 : i64, tpu.core_type = #tpu.core_type<tc>, window_params = [{transform_indices = @transform_0, window_bounds = array<i64: 16, 32>}, {transform_indices = @transform_1, window_bounds = array<i64: 32, 256>}, {transform_indices = @transform_2, window_bounds = array<i64: 128, 128>}, {transform_indices = @transform_3, window_bounds = array<i64: 16, 128>}]} {
    %c0_i32 = arith.constant 0 : i32
    %0 = arith.cmpi eq, %arg2, %c0_i32 : i32
    %1 = arith.extui %0 : i1 to i32
    %c0_i32_0 = arith.constant 0 : i32
    %2 = arith.cmpi ne, %1, %c0_i32_0 : i32
    scf.if %2 {
      %cst_13 = arith.constant 0.000000e+00 : f32
      %23 = vector.broadcast %cst_13 : f32 to vector<16x128xf32>
      %c0_14 = arith.constant 0 : index
      %c0_15 = arith.constant 0 : index
      %24 = vector.load %arg7[%c0_14, %c0_15] : memref<16x128xf32, #tpu.memory_space<vmem>>, vector<16x128xf32>
      tpu.vector_store %arg7[%c0_14, %c0_15], %23 {strides = array<i32>} : memref<16x128xf32, #tpu.memory_space<vmem>>, vector<16x128xf32>,
    } else {
    }
    %c0 = arith.constant 0 : index
    %c0_1 = arith.constant 0 : index
    %3 = vector.load %arg3[%c0, %c0_1] : memref<16x32xf32, #tpu.memory_space<vmem>>, vector<16x32xf32>
    %c0_2 = arith.constant 0 : index
    %c0_3 = arith.constant 0 : index
    %4 = vector.load %arg4[%c0_2, %c0_3] : memref<32x256xf32, #tpu.memory_space<vmem>>, vector<32x256xf32>
    %cst = arith.constant dense<0.000000e+00> : vector<16x256xf32>
    %5 = tpu.matmul %3, %4, %cst {dimension_numbers = #tpu.dot_dimension_numbers<[1], [0], [0], [1], [0, 0, 1, 1], [], []>} : vector<16x32xf32>, vector<32x256xf32>, vector<16x256xf32> -> vector<16x256xf32>
    %6 = vector.extract_strided_slice %5 {offsets = [0, 0], sizes = [16, 128], strides = [1, 1]} : vector<16x256xf32> to vector<16x128xf32>
    %7 = vector.extract_strided_slice %5 {offsets = [0, 128], sizes = [16, 128], strides = [1, 1]} : vector<16x256xf32> to vector<16x128xf32>
    %8 = arith.negf %6 : vector<16x128xf32>
    %9 = math.exp %8 : vector<16x128xf32>
    %cst_4 = arith.constant 1.000000e+00 : f32
    %10 = vector.broadcast %cst_4 : f32 to vector<16x128xf32>
    %11 = arith.addf %10, %9 : vector<16x128xf32>
    %12 = arith.divf %10, %11 : vector<16x128xf32>
    %13 = arith.mulf %6, %12 : vector<16x128xf32>
    %14 = arith.mulf %13, %7 : vector<16x128xf32>
    %c0_5 = arith.constant 0 : index
    %c0_6 = arith.constant 0 : index
    %15 = vector.load %arg7[%c0_5, %c0_6] : memref<16x128xf32, #tpu.memory_space<vmem>>, vector<16x128xf32>
    %c0_7 = arith.constant 0 : index
    %c0_8 = arith.constant 0 : index
    %16 = vector.load %arg5[%c0_7, %c0_8] : memref<128x128xf32, #tpu.memory_space<vmem>>, vector<128x128xf32>
    %cst_9 = arith.constant dense<0.000000e+00> : vector<16x128xf32>
    %17 = tpu.matmul %14, %16, %cst_9 {dimension_numbers = #tpu.dot_dimension_numbers<[1], [0], [0], [1], [0, 0, 1, 1], [], []>} : vector<16x128xf32>, vector<128x128xf32>, vector<16x128xf32> -> vector<16x128xf32>
    %18 = arith.addf %15, %17 : vector<16x128xf32>
    %c0_10 = arith.constant 0 : index
    %c0_11 = arith.constant 0 : index
    %19 = vector.load %arg7[%c0_10, %c0_11] : memref<16x128xf32, #tpu.memory_space<vmem>>, vector<16x128xf32>
    tpu.vector_store %arg7[%c0_10, %c0_11], %18 {strides = array<i32>} : memref<16x128xf32, #tpu.memory_space<vmem>>, vector<16x128xf32>,
    %c2_i32 = arith.constant 2 : i32
    %20 = arith.cmpi eq, %arg2, %c2_i32 : i32
    %21 = arith.extui %20 : i1 to i32
    %c0_i32_12 = arith.constant 0 : i32
    %22 = arith.cmpi ne, %21, %c0_i32_12 : i32
    scf.if %22 {
      %c0_13 = arith.constant 0 : index
      %c0_14 = arith.constant 0 : index
      %23 = vector.load %arg7[%c0_13, %c0_14] : memref<16x128xf32, #tpu.memory_space<vmem>>, vector<16x128xf32>
      %c0_15 = arith.constant 0 : index
      %c0_16 = arith.constant 0 : index
      %24 = vector.load %arg6[%c0_15, %c0_16] : memref<16x128xf32, #tpu.memory_space<vmem>>, vector<16x128xf32>
      tpu.vector_store %arg6[%c0_15, %c0_16], %23 {strides = array<i32>} : memref<16x128xf32, #tpu.memory_space<vmem>>, vector<16x128xf32>,
    } else {
    }
    return
  }
  func.func @transform_0(%arg0: i32, %arg1: i32, %arg2: i32) -> (i32, i32) {
    %c0_i32 = arith.constant 0 : i32
    %c0_i32_0 = arith.constant 0 : i32
    return %arg0, %c0_i32 : i32, i32
  }
  func.func @transform_1(%arg0: i32, %arg1: i32, %arg2: i32) -> (i32, i32) {
    %c0_i32 = arith.constant 0 : i32
    %c0_i32_0 = arith.constant 0 : i32
    return %c0_i32, %arg2 : i32, i32
  }
  func.func @transform_2(%arg0: i32, %arg1: i32, %arg2: i32) -> (i32, i32) {
    %c0_i32 = arith.constant 0 : i32
    return %arg2, %arg1 : i32, i32
  }
  func.func @transform_3(%arg0: i32, %arg1: i32, %arg2: i32) -> (i32, i32) {
    %c0_i32 = arith.constant 0 : i32
    return %arg0, %arg1 : i32, i32
  }
}

</mosaic_0001>

<bundles_post_ra>
// kernel: swiglu_pallas.1
= control target key start
LH: loop header
LB: loop body
LE: loop exit
PB: predicated region body
PF: predicated region fallthrough
CT: control target
= control target key end

     0   :  { %s1278_s0 = inlined_call_operand.vmem [shape: f32[16,32], index: 0, kind: input, shape index: {}]   ;;  %s1279_s1 = inlined_call_operand.vmem [shape: f32[32,768], index: 1, kind: input, shape index: {}]   ;;  %s1280_s2 = inlined_call_operand.vmem [shape: f32[384,256], index: 2, kind: input, shape index: {}]   ;;  %s1281_s3 = inlined_call_operand.vmem [shape: f32[16,256], index: 3, kind: output, shape index: {}]  }
   0x1   :  { %1282 = sst [smem:[#allocation6_spill]] %s1279_s1 }
   0x2   :  { %s1070_s12 = smov 0   ;;  %s1072_s13 = smov 0  }
   0x3   :  { %s1074_s14 = smov 0   ;;  %s1076_s15 = smov 0  }
   0x4   :  { %s1078_s16 = smov 0   ;;  %s1080_s17 = smov 0  }
   0x5   :  { %s1082_s18 = smov 0   ;;  %s1084_s19 = smov 0  }
   0x6   :  { %s1086_s20 = smov 0   ;;  %s1088_s21 = smov 0  }
   0x7   :  { %s1090_s22 = smov 0  }
   0x8 LB: > { %s741_s23 = sadd.s32 4294967295, %s1046_s22   ;;  %s25_s24 = sadd.s32 1, %s1038_s20  ;;  %s1046_s22 = sphi %s1090_s22, %s13_s22   ;;  %s1042_s21 = sphi %s1088_s21, %s1296_s21   ;;  %s1038_s20 = sphi %s1086_s20, %s1295_s20   ;;  %s1034_s19 = sphi %s1084_s19, %s1294_s19   ;;  %s1030_s18 = sphi %s1082_s18, %s1293_s18   ;;  %s1026_s17 = sphi %s1080_s17, %s1292_s17   ;;  %s1022_s16 = sphi %s1078_s16, %s1291_s16   ;;  %s1018_s15 = sphi %s1076_s15, %s1290_s15   ;;  %s1014_s14 = sphi %s1074_s14, %s1289_s14   ;;  %s1010_s13 = sphi %s1072_s13, %s1288_s13   ;;  %s1006_s12 = sphi %s1070_s12, %s1287_s12  }
   0x9   : > { %p26_p0 = scmp.ge.s32.totalorder %s25_s24, 3  ;;  %s28_s25 = sadd.s32 1, %s1042_s21 }
   0xa   : > { %s65_s26 = sadd.s32 1, %s1026_s17  ;;  %p72_p1 = scmp.ne.s32.totalorder %s1026_s17, %s1022_s16 }
   0xb   : > { %s1298_s24 = smov (%p26_p0, %s25_s24), 0  ;;  %s1300_s25 = smov (!%p26_p0, %s28_s25), %s1042_s21 }
   0xc   : > { %s62_s27 = ssub.s32 %s1038_s20, %s1298_s24  ;;  %p73_p2 = scmp.eq.s32.totalorder %s1046_s22, 0 }
   0xd   : > { %p30_p3 = scmp.ge.s32.totalorder %s1300_s25, 2  ;;  %p63_p4 = scmp.eq.s32.totalorder %s62_s27, 0 }
   0xe   : > { %p1137_p5 = por %p73_p2, %p72_p1  ;;  %s93_s29 = sadd.s32 1, %s1018_s15 }
   0xf   : > { %s1302_s25 = smov (%p30_p3, %s1300_s25), 0  ;;  %p100_p6 = scmp.ne.s32.totalorder %s1018_s15, %s1014_s14 }
  0x10   : > { %s1145_s30 = scalar_select %p63_p4, %s1026_s17, %s65_s26  }
  0x11   : > { %s89_s4 = ssub.s32 %s1042_s21, %s1302_s25  ;;  %p1151_p9 = por %p100_p6, %p73_p2 }
  0x12   : > { %s90_s5 = sor.u32 %s89_s4, %s62_s27  ;;  %p119_p7 = scmp.eq.s32.totalorder %s89_s4, 0 }
  0x13   : > { %p91_p8 = scmp.eq.s32.totalorder %s90_s5, 0  ;;  %s121_s7 = sadd.s32 1, %s1010_s13 }
  0x14   : > { %p131_p10 = scmp.ne.s32.totalorder %s1010_s13, %s1006_s12  ;;  %p132_p11 = scmp.eq.s32.totalorder %s741_s23, 5 }
  0x15   : > { %s1159_s8 = scalar_select %p91_p8, %s1018_s15, %s93_s29  }
  0x16   : > { %s1162_s9 = scalar_select %p119_p7, %s1010_s13, %s121_s7  }
  0x17   : > { %p1164_p12 = por %p132_p11, %p131_p10  ;;  %p745_p13 = scmp.ge.s32.totalorder %s1046_s22, 6 }
  0x19   : > { %163 = sbr.rel (%p745_p13) target bundleno = 60 (0x3c), region = 20 }
  0x20   : > { %166 = sbr.rel (!%p1137_p5) target bundleno = 46 (0x2e), region = 24  ;;  %s168_s11 = sand.u32 (%p1137_p5), 1, %s1026_s17  }
  0x21   : > { %s767_s26 = sshll.u32 (%p1137_p5), %s1038_s20, 4  ;;  %s746_s27 = sshll.u32 (%p1137_p5), %s168_s11, 6 }
  0x22   : > { %s1286_s1 = sld [smem:[#allocation6_spill]] (%p1137_p5)  ;;  %s170_s23 = scalar_lea.vmem (%p1137_p5), [#allocation3], %s746_s27 }
  0x28   : > { %s173_s5 = scalar_lea.vmem %s1286_s1, %s767_s26 }
  0x29   : > { %v186_v0 = vld [vmem:[%s173_s5] sm:$0xff]  ;;  %v188_v1 = vld [vmem:[%s173_s5 + $0x8] sm:$0xff]  ;;  %v190_v2 = vld [vmem:[%s173_s5 + $0x30] sm:$0xff] }
  0x2a   : > { %187 = vst [vmem:[%s170_s23] sm:$0xff] %v186_v0  ;;  %189 = vst [vmem:[%s170_s23 + $0x8] sm:$0xff] %v188_v1  ;;  %v192_v3 = vld [vmem:[%s173_s5 + $0x38] sm:$0xff]  ;;  %v194_v4 = vld [vmem:[%s173_s5 + $0x60] sm:$0xff] }
  0x2b   : > { %191 = vst [vmem:[%s170_s23 + $0x10] sm:$0xff] %v190_v2  ;;  %v196_v5 = vld [vmem:[%s173_s5 + $0x68] sm:$0xff]  ;;  %193 = vst [vmem:[%s170_s23 + $0x18] sm:$0xff] %v192_v3  ;;  %v198_v6 = vld [vmem:[%s173_s5 + $0x90] sm:$0xff] }
  0x2c   : > { %195 = vst [vmem:[%s170_s23 + $0x20] sm:$0xff] %v194_v4  ;;  %197 = vst [vmem:[%s170_s23 + $0x28] sm:$0xff] %v196_v5  ;;  %v200_v7 = vld [vmem:[%s173_s5 + $0x98] sm:$0xff] }
  0x2d   : > { %199 = vst [vmem:[%s170_s23 + $0x30] sm:$0xff] %v198_v6  ;;  %201 = vst [vmem:[%s170_s23 + $0x38] sm:$0xff] %v200_v7 }
  0x2e PF: > { %207 = sbr.rel (!%p1151_p9) target bundleno = 60 (0x3c), region = 47  ;;  %s209_s28 = sand.u32 (%p1151_p9), 1, %s1018_s15  }
  0x2f   : > { %s768_s7 = sshll.u32 (%p1151_p9), %s1038_s20, 5  ;;  %s749_s11 = sshll.u32 (%p1151_p9), %s209_s28, 7 }
  0x30   : > { %s214_s26 = sadd.s32 (%p1151_p9), %s1042_s21, %s768_s7  ;;  %s211_s6 = scalar_lea.vmem (%p1151_p9), [#allocation4], %s749_s11 }
  0x31   : > { %s752_s27 = sshll.u32 (%p1151_p9), %s214_s26, 3 }
  0x32   : > { %s1184_s1 = scalar_lea.vmem (%p1151_p9), %s1280_s2, %s752_s27 }
  0x33   : > { %v274_v8 = vld [vmem:[%s1184_s1] sm:$0xff] (%p1151_p9)  ;;  %v276_v9 = vld [vmem:[%s1184_s1 + $0x10] sm:$0xff] (%p1151_p9) }
  0x34   : > { %v278_v10 = vld [vmem:[%s1184_s1 + $0x20] sm:$0xff] (%p1151_p9)  ;;  %275 = vst [vmem:[%s211_s6] sm:$0xff] (%p1151_p9), %v274_v8  ;;  %277 = vst [vmem:[%s211_s6 + $0x8] sm:$0xff] (%p1151_p9), %v276_v9  ;;  %v280_v11 = vld [vmem:[%s1184_s1 + $0x30] sm:$0xff] (%p1151_p9) }
  0x35   : > { %279 = vst [vmem:[%s211_s6 + $0x10] sm:$0xff] %v278_v10  ;;  %v282_v12 = vld [vmem:[%s1184_s1 + $0x40] sm:$0xff]  ;;  %v284_v13 = vld [vmem:[%s1184_s1 + $0x50] sm:$0xff]  ;;  %281 = vst [vmem:[%s211_s6 + $0x18] sm:$0xff] %v280_v11 }
  0x36   : > { %283 = vst [vmem:[%s211_s6 + $0x20] sm:$0xff] %v282_v12  ;;  %285 = vst [vmem:[%s211_s6 + $0x28] sm:$0xff] %v284_v13  ;;  %v286_v14 = vld [vmem:[%s1184_s1 + $0x60] sm:$0xff]  ;;  %v288_v15 = vld [vmem:[%s1184_s1 + $0x70] sm:$0xff] }
  0x37   : > { %v290_v16 = vld [vmem:[%s1184_s1 + $0x80] sm:$0xff]  ;;  %287 = vst [vmem:[%s211_s6 + $0x30] sm:$0xff] %v286_v14  ;;  %289 = vst [vmem:[%s211_s6 + $0x38] sm:$0xff] %v288_v15  ;;  %v292_v17 = vld [vmem:[%s1184_s1 + $0x90] sm:$0xff] }
  0x38   : > { %291 = vst [vmem:[%s211_s6 + $0x40] sm:$0xff] %v290_v16  ;;  %v294_v18 = vld [vmem:[%s1184_s1 + $0xa0] sm:$0xff]  ;;  %v296_v19 = vld [vmem:[%s1184_s1 + $0xb0] sm:$0xff]  ;;  %293 = vst [vmem:[%s211_s6 + $0x48] sm:$0xff] %v292_v17 }
  0x39   : > { %295 = vst [vmem:[%s211_s6 + $0x50] sm:$0xff] %v294_v18  ;;  %297 = vst [vmem:[%s211_s6 + $0x58] sm:$0xff] %v296_v19  ;;  %v298_v20 = vld [vmem:[%s1184_s1 + $0xc0] sm:$0xff]  ;;  %v300_v21 = vld [vmem:[%s1184_s1 + $0xd0] sm:$0xff] }
  0x3a   : > { %v302_v22 = vld [vmem:[%s1184_s1 + $0xe0] sm:$0xff]  ;;  %299 = vst [vmem:[%s211_s6 + $0x60] sm:$0xff] %v298_v20  ;;  %301 = vst [vmem:[%s211_s6 + $0x68] sm:$0xff] %v300_v21  ;;  %v304_v23 = vld [vmem:[%s1184_s1 + $0xf0] sm:$0xff] }
  0x3b   : > { %303 = vst [vmem:[%s211_s6 + $0x70] sm:$0xff] %v302_v22  ;;  %305 = vst [vmem:[%s211_s6 + $0x78] sm:$0xff] %v304_v23 }
  0x3c PF: > { %p753_p0 = scmp.ge.s32.totalorder %s1046_s22, 1  ;;  %p310_p1 = scmp.lt.s32.totalorder %s1046_s22, 7 }
  0x3e   : > { %p311_p2 = pnand %p753_p0, %p310_p1 }
  0x3f   : > { %s317_s5 = sand.u32 (!%p311_p2), 1, %s1022_s16   ;;  %s324_s23 = sand.u32 (!%p311_p2), 1, %s1014_s14  }
  0x40   : > { %314 = sbr.rel (%p311_p2) target bundleno = 567 (0x237), region = 85  ;;  %s754_s28 = sshll.u32 (!%p311_p2), %s317_s5, 6 }
  0x41   : > { %s755_s7 = sshll.u32 (!%p311_p2), %s324_s23, 7  ;;  %s352_s11 = sand.u32 (!%p311_p2), 1, %s1006_s12  }
  0x42   : > { %s756_s26 = sshll.u32 (!%p311_p2), %s352_s11, 4  ;;  %s319_s27 = scalar_lea.vmem (!%p311_p2), [#allocation3], %s754_s28 }
  0x43   : > { %s1207_s1 = scalar_lea.vmem (!%p311_p2), [#allocation4], %s755_s7  ;;  %s1209_s29 = scalar_lea.vmem (!%p311_p2), [#allocation5], %s756_s26 }
  0x44   : > { %p757_p3 = scmp.ne.s32.totalorder (!%p311_p2), %s1030_s18, 0 }
  0x47   : > { %367 = sbr.rel (%p757_p3) target bundleno = 78 (0x4e), region = 97  ;;  %v1048_v24 = vmov (!%p757_p3), 0.0  }
  0x48   : > { %368 = vst [vmem:[#allocation2] sm:$0xff] (!%p757_p3), %v1048_v24  ;;  %369 = vst [vmem:[#allocation2 + $0x8] sm:$0xff] (!%p757_p3), %v1048_v24 }
  0x4e PF: > { %v373_v25 = vld [vmem:[%s319_s27 + $0x8] sm:$0xff]  ;;  %v375_v26 = vld [vmem:[%s319_s27 + $0x18] sm:$0xff]  ;;  %v372_v27 = vld [vmem:[%s319_s27] sm:$0xff]  ;;  %v1049_v32 = vmov 0.0   ;;  %vm380_vm0 = vcmask 261120   ;;  %p762_p4 = scmp.ne.s32.totalorder %s1030_s18, 2 }
  0x4f   : > { %v822_v28 = vpack.c.bf16 %v375_v26, %v373_v25  ;;  %v374_v29 = vld [vmem:[%s319_s27 + $0x10] sm:$0xff]  ;;  %v377_v30 = vld [vmem:[%s319_s27 + $0x28] sm:$0xff]  ;;  %v379_v31 = vld [vmem:[%s319_s27 + $0x38] sm:$0xff]  ;;  %451 = vmatprep.mubr.f32.mxu0 %v1049_v32 }
  0x50   : > { %v824_v33 = vpack.c.bf16 %v374_v29, %v372_v27  ;;  %v826_v34 = vpack.c.bf16 %v379_v31, %v377_v30  ;;  %v376_v35 = vld [vmem:[%s319_s27 + $0x20] sm:$0xff]  ;;  %v378_v36 = vld [vmem:[%s319_s27 + $0x30] sm:$0xff]  ;;  %v371_v39 = vld [vmem:[%s1278_s0 + $0x8] sm:$0xff] }
  0x51   : > { %823 = vmatprep.subr.bf16.mxu0 %v822_v28  ;;  %v828_v37 = vpack.c.bf16 %v378_v36, %v376_v35  ;;  %v370_v38 = vld [vmem:[%s1278_s0] sm:$0xff]  ;;  %v482_v40 = vld [vmem:[%s1207_s1] sm:$0xff]  ;;  %v483_v41 = vld [vmem:[%s1207_s1 + $0x8] sm:$0xff] }
  0x52   : > { %825 = vmatpush1.bf16.msra.mxu0 %v824_v33  ;;  %v830_v42 = vpack.c.bf16 %v483_v41, %v482_v40  ;;  %v484_v43 = vld [vmem:[%s1207_s1 + $0x10] sm:$0xff]  ;;  %v485_v44 = vld [vmem:[%s1207_s1 + $0x18] sm:$0xff]  ;;  %v486_v46 = vld [vmem:[%s1207_s1 + $0x20] sm:$0xff] }
  0x53   : > { %827 = vmatprep.subr.bf16.mxu0 %v826_v34  ;;  %v834_v45 = vpack.c.bf16 %v485_v44, %v484_v43  ;;  %v487_v47 = vld [vmem:[%s1207_s1 + $0x28] sm:$0xff]  ;;  %v488_v49 = vld [vmem:[%s1207_s1 + $0x30] sm:$0xff]  ;;  %v489_v50 = vld [vmem:[%s1207_s1 + $0x38] sm:$0xff] }
  0x54   : > { %831 = vmatprep.subr.bf16.mxu1 %v830_v42  ;;  %v838_v48 = vpack.c.bf16 %v487_v47, %v486_v46  ;;  %v842_v51 = vpack.c.bf16 %v489_v50, %v488_v49  ;;  %v490_v52 = vld [vmem:[%s1207_s1 + $0x40] sm:$0xff]  ;;  %v491_v53 = vld [vmem:[%s1207_s1 + $0x48] sm:$0xff]  ;;  %v492_v55 = vld [vmem:[%s1207_s1 + $0x50] sm:$0xff] }
  0x55   : > { %833 = vmatpush3.bf16.msra.mxu1 %v830_v42  ;;  %v846_v54 = vpack.c.bf16 %v491_v53, %v490_v52  ;;  %v493_v56 = vld [vmem:[%s1207_s1 + $0x58] sm:$0xff]  ;;  %v494_v58 = vld [vmem:[%s1207_s1 + $0x60] sm:$0xff]  ;;  %v495_v59 = vld [vmem:[%s1207_s1 + $0x68] sm:$0xff] }
  0x56   : > { %829 = vmatpush1.bf16.msra.mxu0 %v828_v37  ;;  %835 = vmatprep.subr.bf16.mxu1 %v834_v45  ;;  %v850_v57 = vpack.c.bf16 %v493_v56, %v492_v55  ;;  %v854_v60 = vpack.c.bf16 %v495_v59, %v494_v58  ;;  %v496_v61 = vld [vmem:[%s1207_s1 + $0x70] sm:$0xff]  ;;  %v497_v62 = vld [vmem:[%s1207_s1 + $0x78] sm:$0xff] }
  0x57   : > { %v858_v63 = vpack.c.bf16 %v497_v62, %v496_v61  ;;  %v481_v16 = vld [vmem:[#allocation2 + $0x8] sm:$0xff]  ;;  %v480_v17 = vld [vmem:[#allocation2] sm:$0xff] }
  0x59   : > { %758 = vmatmul.mubr.msk.f32.vlgmr.msra.gmra.mrb[0].mxu0 %vm380_vm0, %v370_v38  ;;  %837 = vmatpush3.bf16.msra.mxu1 %v834_v45 }
  0x5a   : > { %457 = vmatprep.mubr.f32.mxu0 %v1049_v32  ;;  %839 = vmatprep.subr.bf16.mxu1 %v838_v48 }
  0x5d   : > { %759 = vmatmul.mubr.msk.f32.gmra.mrb[2].mxu0 %vm380_vm0, %v371_v39  ;;  %841 = vmatpush3.bf16.msra.mxu1 %v838_v48 }
  0x5e   : > { %843 = vmatprep.subr.bf16.mxu1 %v842_v51 }
  0x61   : > { %845 = vmatpush3.bf16.msra.mxu1 %v842_v51 }
  0x62   : > { %847 = vmatprep.subr.bf16.mxu1 %v846_v54 }
  0x65   : > { %849 = vmatpush3.bf16.msra.mxu1 %v846_v54 }
  0x66   : > { %851 = vmatprep.subr.bf16.mxu1 %v850_v57 }
  0x69   : > { %853 = vmatpush3.bf16.msra.mxu1 %v850_v57 }
  0x6a   : > { %855 = vmatprep.subr.bf16.mxu1 %v854_v60 }
  0x6d   : > { %857 = vmatpush3.bf16.msra.mxu1 %v854_v60 }
  0x6e   : > { %859 = vmatprep.subr.bf16.mxu1 %v858_v63 }
  0x71   : > { %861 = vmatpush3.bf16.msra.mxu1 %v858_v63 }
 0x12c   : > { %v453_v0 = vpop.f32.mrb[0].mxu0 }
 0x12d   : > { %v760_v1 = vmul.f32 -1.442695, %v453_v0  ;;  %v455_v2 = vpop.f32.mrb[1].mxu0 }
 0x12f   : > { %952 = vpow2.f32 %v760_v1 }
 0x130   : > { %v459_v3 = vpop.f32.mrb[2].mxu0 }
 0x131   : > { %v761_v4 = vmul.f32 -1.442695, %v459_v3  ;;  %v461_v5 = vpop.f32.mrb[3].mxu0 }
 0x133   : > { %954 = vpow2.f32 %v761_v4 }
 0x139   : > { %v953_v6 = vpop.eup %952 }
 0x13a   : > { %v470_v7 = vadd.f32 1.0, %v953_v6 }
 0x13c   : > { %956 = vrcp.f32 %v470_v7 }
 0x13d   : > { %v955_v8 = vpop.eup %954 }
 0x13e   : > { %v471_v9 = vadd.f32 1.0, %v955_v8 }
 0x140   : > { %958 = vrcp.f32 %v471_v9 }
 0x146   : > { %v957_v10 = vpop.eup %956 }
 0x147   : > { %v476_v11 = vmul.f32 %v957_v10, %v453_v0 }
 0x149   : > { %v478_v12 = vmul.f32 %v476_v11, %v455_v2 }
 0x14a   : > { %v959_v13 = vpop.eup %958 }
 0x14b   : > { %v477_v14 = vmul.f32 %v959_v13, %v459_v3  ;;  %819 = vmatprep.mubr.f32.mxu1 %v478_v12 }
 0x14d   : > { %v479_v15 = vmul.f32 %v477_v14, %v461_v5 }
 0x14f   : > { %820 = vmatmul.mubr.f32.vlgmr.msra.gmra.mrb[0].mxu1 %v479_v15 }
 0x220   : > { %580 = sbr.rel (%p762_p4) target bundleno = 559 (0x22f), region = 101 }
 0x222   : > { %v821_v18 = vpop.f32.mrb[0].mxu1 }
 0x223   : > { %v574_v19 = vadd.f32 %v821_v18, %v481_v16  ;;  %v564_v20 = vpop.f32.mrb[1].mxu1 }
 0x224   : > { %v573_v21 = vadd.f32 %v564_v20, %v480_v17 }
 0x225   : > { %576 = vst [vmem:[#allocation2 + $0x8] sm:$0xff] %v574_v19 }
 0x226   : > { %575 = vst [vmem:[#allocation2] sm:$0xff] %v573_v21 }
 0x22c   : > { %v582_v23 = vld [vmem:[#allocation2 + $0x8] sm:$0xff] }
 0x22d   : > { %v581_v22 = vld [vmem:[#allocation2] sm:$0xff]  ;;  %584 = vst [vmem:[%s1209_s29 + $0x8] sm:$0xff] %v582_v23 }
 0x22e   : > { %583 = vst [vmem:[%s1209_s29] sm:$0xff] %v581_v22 }
 0x22f PF: > { %591 = sbr.rel (!%p1164_p12) target bundleno = 567 (0x237), region = 105  ;;  %s764_s6 = sshll.u32 (%p1164_p12), %s1034_s19, 3 }
 0x230   : > { %s596_s18 = scalar_lea.vmem (%p1164_p12), %s1281_s3, %s764_s6 }
 0x234   : > { %v628_v25 = vld [vmem:[%s1209_s29 + $0x8] sm:$0xff] (%p1164_p12) }
 0x235   : > { %v626_v24 = vld [vmem:[%s1209_s29] sm:$0xff] (%p1164_p12)  ;;  %629 = vst [vmem:[%s596_s18 + $0x10] sm:$0xff] (%p1164_p12), %v628_v25 }
 0x236   : > { %627 = vst [vmem:[%s596_s18] sm:$0xff] %v626_v24 }
 0x237 PF: > { %s13_s22 = sadd.s32 1, %s1046_s22   ;;  %s1287_s12 = smov %s1010_s13 }
 0x238   : > { %p10_p5 = scmp.ge.s32.totalorder %s13_s22, 8   ;;  %s1288_s13 = smov %s1162_s9 }
 0x239   : > { %s1289_s14 = smov %s1018_s15  ;;  %s1290_s15 = smov %s1159_s8 }
 0x23a   : > { %s1291_s16 = smov %s1026_s17  ;;  %s1292_s17 = smov %s1145_s30 }
 0x23b   : > { %s1293_s18 = smov %s1038_s20  ;;  %s1294_s19 = smov %s1042_s21 }
 0x23c   : > { %s1295_s20 = smov %s1298_s24  ;;  %s1296_s21 = smov %s1302_s25 }
 0x23d   :  { %12 = sbr.rel (!%p10_p5) target bundleno = 8 (0x8), region = 185 }

</bundles_post_ra>
